<compile_context>
chip_gen: v6e
topology: v6e:2x2x1
jax: 0.10.0
libtpu: 0.0.40
codegen_flags: <defaults>
</compile_context>

<pallas_src>
import jax
import jax.numpy as jnp
from jax import lax
from jax.experimental import pallas as pl
from jax.experimental.pallas import tpu as pltpu

_NEG = -1e9                              # padded-class logit (exp -> exactly 0)
_TRANS_B = (((1,), (1,)), ((), ()))      # contract on the shared (lane) N axis


def _round_up(x, m):
    return ((x + m - 1) // m) * m


def _softplus(z):
    # max(z, 0) + log(1 + exp(-|z|)) -- written with log/exp only.
    return jnp.maximum(z, 0.0) + jnp.log(1.0 + jnp.exp(-jnp.abs(z)))


# --------------------------- Bernoulli (D == 1) ----------------------------

def _bern_kernel(nvalid_ref, mu_ref, re_ref, annr_ref, y_ref, itm_ref,
                 ll_ref, tot_ref):
    # mu_ref  : (K, 1)   component means (random-effect centering folded in)
    # re_ref  : (A, 1)   annotator random effects
    # annr_ref: (1, Nc)  annotator id per annotation (int32)
    # y_ref   : (1, Nc)  0/1 label per annotation (float32)
    # itm_ref : (1, Nc)  item id per annotation (int32, -1 for padding)
    # ll_ref  : (K, Nc)  per-property log-likelihood chunk (output)
    # tot_ref : (K, Mp)  per-property total_ll partial (resident across chunks)
    A = re_ref.shape[0]
    Nc = annr_ref.shape[1]
    Mp = tot_ref.shape[1]

    @pl.when(pl.program_id(1) == 0)
    def _():
        tot_ref[...] = jnp.zeros_like(tot_ref)

    n_valid = nvalid_ref[pl.program_id(0)]

    @pl.when(pl.program_id(1) * Nc < n_valid)          # skip fully-padded chunks
    def _():
        # annotator random-effect gather (D == 1): masked sublane reduce
        gather_oh = (lax.broadcasted_iota(jnp.int32, (A, Nc), 0)
                     == annr_ref[...]).astype(jnp.float32)           # (A, Nc)
        rand = jnp.sum(re_ref[...] * gather_oh, axis=0, keepdims=True)  # (1, Nc)
        z = mu_ref[...] + rand                                       # (K, Nc)
        ll = y_ref[...] * z - _softplus(z)                           # (K, Nc)
        ll_ref[...] = ll
        # total_ll.index_add_(1, items, ll): lane-resident one-hot, f32 MXU.
        item_oh = (lax.broadcasted_iota(jnp.int32, (Mp, Nc), 0)
                   == itm_ref[...]).astype(jnp.float32)              # (Mp, Nc)
        tot_ref[...] += lax.dot_general(ll, item_oh, _TRANS_B,
                                        preferred_element_type=jnp.float32)


# --------------------------- Categorical (D > 1) ---------------------------

def _cat_kernel(nvalid_ref, mu_ref, re_ref, annr_ref, lab_ref, itm_ref,
                ll_ref, tot_ref):
    # mu_ref  : (K, Dp)  centered means, padded classes = _NEG
    # re_ref  : (Dp, A)  annotator random effects (transposed, zero-padded)
    K, Dp = mu_ref.shape
    A = re_ref.shape[1]
    Nc = annr_ref.shape[1]
    Mp = tot_ref.shape[1]

    @pl.when(pl.program_id(1) == 0)
    def _():
        tot_ref[...] = jnp.zeros_like(tot_ref)

    n_valid = nvalid_ref[pl.program_id(0)]

    @pl.when(pl.program_id(1) * Nc < n_valid)          # skip fully-padded chunks
    def _():
        # annotator random-effect gather as an exact one-hot matmul (MXU)
        gather_oh = (lax.broadcasted_iota(jnp.int32, (A, Nc), 0)
                     == annr_ref[...]).astype(jnp.float32)           # (A, Nc)
        rand = jnp.dot(re_ref[...], gather_oh,
                       preferred_element_type=jnp.float32)           # (Dp, Nc)
        mu = mu_ref[...]                                             # (K, Dp)
        lab_oh = (lax.broadcasted_iota(jnp.int32, (Dp, Nc), 0)
                  == lab_ref[...]).astype(jnp.float32)               # (Dp, Nc)
        # logit at the labeled class: tiny MXU matmul + one (Dp, Nc) reduce
        sel = (jnp.dot(mu, lab_oh, preferred_element_type=jnp.float32)
               + jnp.sum(rand * lab_oh, axis=0, keepdims=True))      # (K, Nc)
        # log-sum-exp over classes; `mean` is consumed exactly once.
        mean = mu[:, :, None] + rand[None, :, :]                     # (K, Dp, Nc)
        mmax = jnp.max(mean, axis=1)                                 # (K, Nc)
        lse = jnp.log(jnp.sum(jnp.exp(mean - mmax[:, None, :]), axis=1)) + mmax
        ll = sel - lse                                               # (K, Nc)
        ll_ref[...] = ll
        item_oh = (lax.broadcasted_iota(jnp.int32, (Mp, Nc), 0)
                   == itm_ref[...]).astype(jnp.float32)              # (Mp, Nc)
        tot_ref[...] += lax.dot_general(ll, item_oh, _TRANS_B,
                                        preferred_element_type=jnp.float32)


# ------------------------------ pallas_call --------------------------------

def _group_call(kernel, nvalid, mu, re, annr, lab, itm, m_pad, n_chunk):
    P, K, _ = mu.shape
    n_pad = annr.shape[2]
    n_chunks = n_pad // n_chunk
    sq = pl.Squeezed()

    def per_prop(a, b):      # one block per property, same for every chunk
        return pl.BlockSpec((sq, a, b), lambda p, c, nv: (p, 0, 0))

    def per_chunk(a, b):     # one block per (property, N-chunk)
        return pl.BlockSpec((sq, a, b), lambda p, c, nv: (p, 0, c))

    grid_spec = pltpu.PrefetchScalarGridSpec(
        num_scalar_prefetch=1,                      # per-property valid counts
        grid=(P, n_chunks),
        in_specs=[
            per_prop(mu.shape[1], mu.shape[2]),     # mu (centered, class-padded)
            per_prop(re.shape[1], re.shape[2]),     # random effects
            per_chunk(1, n_chunk),                  # annotator ids
            per_chunk(1, n_chunk),                  # labels
            per_chunk(1, n_chunk),                  # item ids (-1 = padding)
        ],
        out_specs=(
            per_chunk(K, n_chunk),                                     # ll
            pl.BlockSpec((sq, K, m_pad), lambda p, c, nv: (p, 0, 0)),   # tot partial
        ),
    )
    return pl.pallas_call(
        kernel,
        out_shape=(jax.ShapeDtypeStruct((P, K, n_pad), jnp.float32),
                   jax.ShapeDtypeStruct((P, K, m_pad), jnp.float32)),
        grid_spec=grid_spec,
        compiler_params=pltpu.CompilerParams(
            # P axis is independent per property (megacore-shardable on v7x);
            # the N-chunk axis accumulates each property's resident partial.
            dimension_semantics=("parallel", "arbitrary"),
            vmem_limit_bytes=32 * 1024 * 1024),
    )(nvalid, mu, re, annr, lab, itm)


# -------------------------------- wrapper ----------------------------------

def predicate_node_annotation_likelihood_forward(
        mus, random_effects, annotations, items, annotators, n_components,
        num_items=None, n_chunk=128):
    """Mirrors Likelihood.forward for the default (non-ordinal) configuration.

    n_chunk must be a multiple of 128 (128 here; ~512 is a good production
    value).  confidences / train_annotators / dev_annotators_in_train are
    unused under the default flags.
    """
    props = list(annotations.keys())
    K = n_components
    if num_items is None:
        # single device->host sync (items sorted, as assumed by the PyTorch code)
        num_items = int(jnp.max(jnp.stack([items[p][-1] for p in props]))) + 1
    m_pad = _round_up(num_items, 128)

    n_of = {p: int(annotations[p].shape[0]) for p in props}

    def centered_mu(p):
        # Fold `random - random.mean(0)` centering into mu (tiny XLA op).
        mu = mus[p].astype(jnp.float32)
        if n_of[p] == 0:
            return mu
        rmean = jnp.mean(
            random_effects[p].astype(jnp.float32)[annotators[p]], axis=0)
        return mu - rmean[None, :]

    def pad_n(x, n_pad, fill):
        return jnp.pad(x, (0, n_pad - x.shape[0]), constant_values=fill)[None]

    bern_props = [p for p in props if mus[p].shape[-1] == 1]
    cat_props = [p for p in props if mus[p].shape[-1] > 1]

    lls = {}
    total = jnp.zeros((K, m_pad), jnp.float32)

    if bern_props:
        n_pad_b = _round_up(max(n_of[p] for p in bern_props), n_chunk)
        a_pad_b = _round_up(
            max(int(random_effects[p].shape[0]) for p in bern_props), 8)
        mu_l, re_l, annr_l, y_l, itm_l = [], [], [], [], []
        for p in bern_props:
            mu_l.append(centered_mu(p))                                 # (K, 1)
            re = random_effects[p].astype(jnp.float32)                  # (A, 1)
            re_l.append(jnp.pad(re, ((0, a_pad_b - re.shape[0]), (0, 0))))
            annr_l.append(pad_n(annotators[p].astype(jnp.int32), n_pad_b, 0))
            y_l.append(pad_n(annotations[p].astype(jnp.float32), n_pad_b, 0.0))
            itm_l.append(pad_n(items[p].astype(jnp.int32), n_pad_b, -1))
        nvalid = jnp.array([n_of[p] for p in bern_props], jnp.int32)
        ll_b, tot_b = _group_call(
            _bern_kernel, nvalid, jnp.stack(mu_l), jnp.stack(re_l),
            jnp.stack(annr_l), jnp.stack(y_l), jnp.stack(itm_l), m_pad, n_chunk)
        total = total + jnp.sum(tot_b, axis=0)
        for i, p in enumerate(bern_props):
            lls[p] = ll_b[i, :, :n_of[p]]

    if cat_props:
        n_pad_c = _round_up(max(n_of[p] for p in cat_props), n_chunk)
        a_pad_c = _round_up(
            max(int(random_effects[p].shape[0]) for p in cat_props), 8)
        d_pad_c = _round_up(max(int(mus[p].shape[-1]) for p in cat_props), 8)
        mu_l, re_l, annr_l, lab_l, itm_l = [], [], [], [], []
        for p in cat_props:
            mu = centered_mu(p)                                         # (K, D)
            d = mu.shape[1]
            mu_l.append(jnp.pad(mu, ((0, 0), (0, d_pad_c - d)),
                                constant_values=_NEG))
            re = random_effects[p].astype(jnp.float32)                  # (A, D)
            re = jnp.pad(re, ((0, a_pad_c - re.shape[0]), (0, d_pad_c - d)))
            re_l.append(re.T)                                           # (Dp, A)
            annr_l.append(pad_n(annotators[p].astype(jnp.int32), n_pad_c, 0))
            lab_l.append(pad_n(annotations[p].astype(jnp.int32), n_pad_c, 0))
            itm_l.append(pad_n(items[p].astype(jnp.int32), n_pad_c, -1))
        nvalid = jnp.array([n_of[p] for p in cat_props], jnp.int32)
        ll_c, tot_c = _group_call(
            _cat_kernel, nvalid, jnp.stack(mu_l), jnp.stack(re_l),
            jnp.stack(annr_l), jnp.stack(lab_l), jnp.stack(itm_l), m_pad, n_chunk)
        total = total + jnp.sum(tot_c, axis=0)
        for i, p in enumerate(cat_props):
            lls[p] = ll_c[i, :, :n_of[p]]

    likelihoods = {p: lls[p] for p in props}
    total_ll = total[:, :num_items]
    return likelihoods, total_ll


# ------------------------------- reference ---------------------------------

def _ref_forward(mus, random_effects, annotations, items, annotators,
                 n_components, num_items):
    """Pure-jnp reference of the same forward pass."""
    K = n_components
    total = jnp.zeros((K, num_items), jnp.float32)
    lls = {}
    for p, anno in annotations.items():
        mu = mus[p].astype(jnp.float32)
        rand = random_effects[p].astype(jnp.float32)[annotators[p]]
        rand = rand - rand.mean(axis=0, keepdims=True)
        mean = mu[:, None, :] + rand[None]
        if mu.shape[-1] == 1:
            z = mean[..., 0]
            ll = anno.astype(jnp.float32)[None, :] * z - _softplus(z)
        else:
            logp = jax.nn.log_softmax(mean, axis=-1)
            idx = anno.astype(jnp.int32)
            ll = jnp.take_along_axis(
                logp,
                jnp.broadcast_to(idx[None, :, None], (K, idx.shape[0], 1)),
                axis=-1)[..., 0]
        lls[p] = ll
        total = total.at[:, items[p]].add(ll)
    return lls, total


if __name__ == "__main__":
    key = jax.random.PRNGKey(0)

    K = 8        # n_components
    M = 64       # items
    # (prop_dim, num_annotators, num_annotations): D == 1 -> Bernoulli,
    # D > 1 -> Categorical.  Unequal N exercises the chunk-skip path.
    prop_specs = {
        "genericity-pred-dynamic":      (1, 16, 200),
        "genericity-pred-hypothetical": (1, 12, 150),
        "factuality-factual":           (1, 16, 96),
        "time-duration":                (11, 16, 130),
        "time-confidence":              (4, 8, 170),
    }

    mus, random_effects, annotations, annotators, items = {}, {}, {}, {}, {}
    for p, (D, A, N) in prop_specs.items():
        key, k_mu, k_re, k_ann, k_lab = jax.random.split(key, 5)
        mus[p] = jax.random.normal(k_mu, (K, D), jnp.float32)
        # Parameter(torch.randn(num_annotators, prop_dim) * 0.1)
        random_effects[p] = jax.random.normal(k_re, (A, D), jnp.float32) * 0.1
        annotators[p] = jax.random.randint(k_ann, (N,), 0, A, jnp.int32)
        if D == 1:
            annotations[p] = jax.random.bernoulli(
                k_lab, 0.5, (N,)).astype(jnp.float32)
        else:
            annotations[p] = jax.random.randint(k_lab, (N,), 0, D, jnp.int32)
        # Sorted item ids covering [0, M) (last element == num_items - 1)
        items[p] = (jnp.arange(N, dtype=jnp.int32) * M) // N

    likelihoods, total_ll = predicate_node_annotation_likelihood_forward(
        mus, random_effects, annotations, items, annotators, K, num_items=M)
    jax.block_until_ready(total_ll)

    ref_lls, ref_total = _ref_forward(
        mus, random_effects, annotations, items, annotators, K, M)

    for p in prop_specs:
        assert likelihoods[p].shape == ref_lls[p].shape, p
        assert jnp.allclose(likelihoods[p], ref_lls[p], atol=2e-4, rtol=2e-4), p
    # f32 one-hot scatter-add: only summation-order differences remain.
    assert jnp.allclose(total_ll, ref_total, atol=5e-3, rtol=1e-3)

    print("KERNEL_OK")
</pallas_src>

<mosaic_0001>
module attributes {stable_mosaic.version = 11 : i64} {
  func.func @_bern_kernel(%arg0: i32, %arg1: i32, %arg2: memref<3xi32, #tpu.memory_space<smem>>, %arg3: memref<1x8x1xf32, #tpu.memory_space<vmem>>, %arg4: memref<1x16x1xf32, #tpu.memory_space<vmem>>, %arg5: memref<1x1x128xi32, #tpu.memory_space<vmem>>, %arg6: memref<1x1x128xf32, #tpu.memory_space<vmem>>, %arg7: memref<1x1x128xi32, #tpu.memory_space<vmem>>, %arg8: memref<1x8x128xf32, #tpu.memory_space<vmem>>, %arg9: memref<1x8x128xf32, #tpu.memory_space<vmem>>) attributes {dimension_semantics = [#tpu.dimension_semantics<parallel>, #tpu.dimension_semantics<arbitrary>], iteration_bounds = array<i64: 3, 2>, scalar_prefetch = 1 : i64, scratch_operands = 0 : i64, tpu.core_type = #tpu.core_type<tc>, window_params = [{transform_indices = @transform_0, window_bounds = array<i64: 1, 8, 1>}, {transform_indices = @transform_1, window_bounds = array<i64: 1, 16, 1>}, {transform_indices = @transform_2, window_bounds = array<i64: 1, 1, 128>}, {transform_indices = @transform_3, window_bounds = array<i64: 1, 1, 128>}, {transform_indices = @transform_4, window_bounds = array<i64: 1, 1, 128>}, {transform_indices = @transform_5, window_bounds = array<i64: 1, 8, 128>}, {transform_indices = @transform_6, window_bounds = array<i64: 1, 8, 128>}]} {
    %c0_i32 = arith.constant 0 : i32
    %0 = arith.cmpi eq, %arg1, %c0_i32 : i32
    %1 = arith.extui %0 : i1 to i32
    %c0_i32_0 = arith.constant 0 : i32
    %2 = arith.cmpi ne, %1, %c0_i32_0 : i32
    scf.if %2 {
      %cst = arith.constant 0.000000e+00 : f32
      %9 = vector.broadcast %cst : f32 to vector<8x128xf32>
      %c0 = arith.constant 0 : index
      %c0_2 = arith.constant 0 : index
      %c0_3 = arith.constant 0 : index
      %10 = vector.load %arg9[%c0, %c0_2, %c0_3] : memref<1x8x128xf32, #tpu.memory_space<vmem>>, vector<1x8x128xf32>
      %11 = vector.shape_cast %10 : vector<1x8x128xf32> to vector<8x128xf32>
      %12 = vector.shape_cast %9 : vector<8x128xf32> to vector<1x8x128xf32>
      tpu.vector_store %arg9[%c0, %c0_2, %c0_3], %12 {strides = array<i32>} : memref<1x8x128xf32, #tpu.memory_space<vmem>>, vector<1x8x128xf32>,
    } else {
    }
    %3 = arith.index_cast %arg0 : i32 to index
    %4 = memref.load %arg2[%3] : memref<3xi32, #tpu.memory_space<smem>>
    %c128_i32 = arith.constant 128 : i32
    %5 = arith.muli %arg1, %c128_i32 : i32
    %6 = arith.cmpi slt, %5, %4 : i32
    %7 = arith.extui %6 : i1 to i32
    %c0_i32_1 = arith.constant 0 : i32
    %8 = arith.cmpi ne, %7, %c0_i32_1 : i32
    scf.if %8 {
      %9 = tpu.iota {dimensions = array<i32: 0>} : vector<16x128xi32>
      %c0 = arith.constant 0 : index
      %c0_2 = arith.constant 0 : index
      %c0_3 = arith.constant 0 : index
      %10 = vector.load %arg5[%c0, %c0_2, %c0_3] : memref<1x1x128xi32, #tpu.memory_space<vmem>>, vector<1x1x128xi32>
      %11 = vector.shape_cast %10 : vector<1x1x128xi32> to vector<1x128xi32>
      %12 = vector.broadcast %11 : vector<1x128xi32> to vector<16x128xi32>
      %13 = arith.cmpi eq, %9, %12 : vector<16x128xi32>
      %14 = arith.extui %13 : vector<16x128xi1> to vector<16x128xi32>
      %15 = arith.sitofp %14 : vector<16x128xi32> to vector<16x128xf32>
      %c0_4 = arith.constant 0 : index
      %c0_5 = arith.constant 0 : index
      %c0_6 = arith.constant 0 : index
      %16 = vector.load %arg4[%c0_4, %c0_5, %c0_6] : memref<1x16x1xf32, #tpu.memory_space<vmem>>, vector<1x16x1xf32>
      %17 = vector.shape_cast %16 : vector<1x16x1xf32> to vector<16x1xf32>
      %18 = vector.broadcast %17 : vector<16x1xf32> to vector<16x128xf32>
      %19 = arith.mulf %18, %15 : vector<16x128xf32>
      %cst = arith.constant dense<0.000000e+00> : vector<128xf32>
      %20 = vector.multi_reduction <add>, %19, %cst [0] : vector<16x128xf32> to vector<128xf32>
      %21 = vector.shape_cast %20 : vector<128xf32> to vector<1x128xf32>
      %c0_7 = arith.constant 0 : index
      %c0_8 = arith.constant 0 : index
      %c0_9 = arith.constant 0 : index
      %22 = vector.load %arg3[%c0_7, %c0_8, %c0_9] : memref<1x8x1xf32, #tpu.memory_space<vmem>>, vector<1x8x1xf32>
      %23 = vector.shape_cast %22 : vector<1x8x1xf32> to vector<8x1xf32>
      %24 = vector.broadcast %23 : vector<8x1xf32> to vector<8x128xf32>
      %25 = vector.broadcast %21 : vector<1x128xf32> to vector<8x128xf32>
      %26 = arith.addf %24, %25 : vector<8x128xf32>
      %c0_10 = arith.constant 0 : index
      %c0_11 = arith.constant 0 : index
      %c0_12 = arith.constant 0 : index
      %27 = vector.load %arg6[%c0_10, %c0_11, %c0_12] : memref<1x1x128xf32, #tpu.memory_space<vmem>>, vector<1x1x128xf32>
      %28 = vector.shape_cast %27 : vector<1x1x128xf32> to vector<1x128xf32>
      %29 = vector.broadcast %28 : vector<1x128xf32> to vector<8x128xf32>
      %30 = arith.mulf %29, %26 : vector<8x128xf32>
      %cst_13 = arith.constant 0.000000e+00 : f32
      %31 = vector.broadcast %cst_13 : f32 to vector<8x128xf32>
      %32 = arith.maximumf %26, %31 : vector<8x128xf32>
      %33 = math.absf %26 : vector<8x128xf32>
      %cst_14 = arith.constant 0.000000e+00 : f32
      %34 = vector.broadcast %cst_14 : f32 to vector<8x128xf32>
      %35 = arith.subf %34, %33 : vector<8x128xf32>
      %36 = math.exp %35 : vector<8x128xf32>
      %cst_15 = arith.constant 1.000000e+00 : f32
      %37 = vector.broadcast %cst_15 : f32 to vector<8x128xf32>
      %38 = arith.addf %37, %36 : vector<8x128xf32>
      %39 = math.log %38 : vector<8x128xf32>
      %40 = arith.addf %32, %39 : vector<8x128xf32>
      %41 = arith.subf %30, %40 : vector<8x128xf32>
      %c0_16 = arith.constant 0 : index
      %c0_17 = arith.constant 0 : index
      %c0_18 = arith.constant 0 : index
      %42 = vector.load %arg8[%c0_16, %c0_17, %c0_18] : memref<1x8x128xf32, #tpu.memory_space<vmem>>, vector<1x8x128xf32>
      %43 = vector.shape_cast %42 : vector<1x8x128xf32> to vector<8x128xf32>
      %44 = vector.shape_cast %41 : vector<8x128xf32> to vector<1x8x128xf32>
      tpu.vector_store %arg8[%c0_16, %c0_17, %c0_18], %44 {strides = array<i32>} : memref<1x8x128xf32, #tpu.memory_space<vmem>>, vector<1x8x128xf32>,
      %45 = tpu.iota {dimensions = array<i32: 0>} : vector<128x128xi32>
      %c0_19 = arith.constant 0 : index
      %c0_20 = arith.constant 0 : index
      %c0_21 = arith.constant 0 : index
      %46 = vector.load %arg7[%c0_19, %c0_20, %c0_21] : memref<1x1x128xi32, #tpu.memory_space<vmem>>, vector<1x1x128xi32>
      %47 = vector.shape_cast %46 : vector<1x1x128xi32> to vector<1x128xi32>
      %48 = vector.broadcast %47 : vector<1x128xi32> to vector<128x128xi32>
      %49 = arith.cmpi eq, %45, %48 : vector<128x128xi32>
      %50 = arith.extui %49 : vector<128x128xi1> to vector<128x128xi32>
      %51 = arith.sitofp %50 : vector<128x128xi32> to vector<128x128xf32>
      %c0_22 = arith.constant 0 : index
      %c0_23 = arith.constant 0 : index
      %c0_24 = arith.constant 0 : index
      %52 = vector.load %arg9[%c0_22, %c0_23, %c0_24] : memref<1x8x128xf32, #tpu.memory_space<vmem>>, vector<1x8x128xf32>
      %53 = vector.shape_cast %52 : vector<1x8x128xf32> to vector<8x128xf32>
      %cst_25 = arith.constant dense<0.000000e+00> : vector<8x128xf32>
      %54 = tpu.matmul %41, %51, %cst_25 {dimension_numbers = #tpu.dot_dimension_numbers<[1], [1], [0], [0], [0, 0, 1, 0], [], []>} : vector<8x128xf32>, vector<128x128xf32>, vector<8x128xf32> -> vector<8x128xf32>
      %55 = arith.addf %53, %54 : vector<8x128xf32>
      %c0_26 = arith.constant 0 : index
      %c0_27 = arith.constant 0 : index
      %c0_28 = arith.constant 0 : index
      %56 = vector.load %arg9[%c0_26, %c0_27, %c0_28] : memref<1x8x128xf32, #tpu.memory_space<vmem>>, vector<1x8x128xf32>
      %57 = vector.shape_cast %56 : vector<1x8x128xf32> to vector<8x128xf32>
      %58 = vector.shape_cast %55 : vector<8x128xf32> to vector<1x8x128xf32>
      tpu.vector_store %arg9[%c0_26, %c0_27, %c0_28], %58 {strides = array<i32>} : memref<1x8x128xf32, #tpu.memory_space<vmem>>, vector<1x8x128xf32>,
    } else {
    }
    return
  }
  func.func @transform_0(%arg0: i32, %arg1: i32, %arg2: memref<3xi32, #tpu.memory_space<smem>>) -> (i32, i32, i32) {
    %c0_i32 = arith.constant 0 : i32
    %c0_i32_0 = arith.constant 0 : i32
    %c0_i32_1 = arith.constant 0 : i32
    return %arg0, %c0_i32, %c0_i32_0 : i32, i32, i32
  }
  func.func @transform_1(%arg0: i32, %arg1: i32, %arg2: memref<3xi32, #tpu.memory_space<smem>>) -> (i32, i32, i32) {
    %c0_i32 = arith.constant 0 : i32
    %c0_i32_0 = arith.constant 0 : i32
    %c0_i32_1 = arith.constant 0 : i32
    return %arg0, %c0_i32, %c0_i32_0 : i32, i32, i32
  }
  func.func @transform_2(%arg0: i32, %arg1: i32, %arg2: memref<3xi32, #tpu.memory_space<smem>>) -> (i32, i32, i32) {
    %c0_i32 = arith.constant 0 : i32
    %c0_i32_0 = arith.constant 0 : i32
    return %arg0, %c0_i32, %arg1 : i32, i32, i32
  }
  func.func @transform_3(%arg0: i32, %arg1: i32, %arg2: memref<3xi32, #tpu.memory_space<smem>>) -> (i32, i32, i32) {
    %c0_i32 = arith.constant 0 : i32
    %c0_i32_0 = arith.constant 0 : i32
    return %arg0, %c0_i32, %arg1 : i32, i32, i32
  }
  func.func @transform_4(%arg0: i32, %arg1: i32, %arg2: memref<3xi32, #tpu.memory_space<smem>>) -> (i32, i32, i32) {
    %c0_i32 = arith.constant 0 : i32
    %c0_i32_0 = arith.constant 0 : i32
    return %arg0, %c0_i32, %arg1 : i32, i32, i32
  }
  func.func @transform_5(%arg0: i32, %arg1: i32, %arg2: memref<3xi32, #tpu.memory_space<smem>>) -> (i32, i32, i32) {
    %c0_i32 = arith.constant 0 : i32
    %c0_i32_0 = arith.constant 0 : i32
    return %arg0, %c0_i32, %arg1 : i32, i32, i32
  }
  func.func @transform_6(%arg0: i32, %arg1: i32, %arg2: memref<3xi32, #tpu.memory_space<smem>>) -> (i32, i32, i32) {
    %c0_i32 = arith.constant 0 : i32
    %c0_i32_0 = arith.constant 0 : i32
    %c0_i32_1 = arith.constant 0 : i32
    return %arg0, %c0_i32, %c0_i32_0 : i32, i32, i32
  }
}

</mosaic_0001>

<bundles_post_ra>
// kernel: tpu_custom_call.1
= control target key start
LH: loop header
LB: loop body
LE: loop exit
PB: predicated region body
PF: predicated region fallthrough
CT: control target
= control target key end

     0   :  { %s1540_s0 = inlined_call_operand.vmem [shape: s32[3], index: 0, kind: input, shape index: {}]   ;;  %s1541_s1 = inlined_call_operand.vmem [shape: f32[3,8,1], index: 1, kind: input, shape index: {}]   ;;  %s1542_s2 = inlined_call_operand.vmem [shape: f32[3,16,1], index: 2, kind: input, shape index: {}]   ;;  %s1543_s3 = inlined_call_operand.vmem [shape: s32[3,1,256], index: 3, kind: input, shape index: {}]   ;;  %s1544_s4 = inlined_call_operand.vmem [shape: f32[3,1,256], index: 4, kind: input, shape index: {}]   ;;  %s1545_s5 = inlined_call_operand.vmem [shape: s32[3,1,256], index: 5, kind: input, shape index: {}]   ;;  %s1546_s6 = inlined_call_operand.hbm [shape: f32[3,8,256], index: 6, kind: output, shape index: {0}]   ;;  %s1547_s7 = inlined_call_operand.hbm [shape: f32[3,8,128], index: 7, kind: output, shape index: {1}]  }
   0x1   :  { %1565 = sst [smem:[#allocation25_spill]] %s1547_s7  ;;  %s13_s26 = sshll.u32 %s1540_s0, 4  ;;  %s14_s26 = int_to_ptr.vmem [resolvable:$true] %s13_s26 }
   0x2   :  { %s1015_s27 = scalar_lea.vmem %s14_s26, 16  ;;  %p1020_p1 = scmp.lt.s32.totalorder %s14_s26, %s14_s26 }
   0x3   :  { %p1016_p0 = scmp.ne.s32.totalorder %s14_s26, %s1015_s27  ;;  %p1021_p2 = scmp.lt.s32.totalorder %s1015_s27, %s1015_s27 }
   0x5   :  { %p1022_p3 = por %p1021_p2, %p1020_p1 }
   0x7   :  { %p1023_p4 = pnand %p1022_p3, %p1016_p0 }
   0x9   :  { %1026 = shalt.err (!%p1023_p4)  }
   0xa   :  { %s1177_s28 = smov [#allocation3]  }
   0xb   :  { %16 = dma.vmem_to_smem %s14_s26, 16, %s1177_s28, [#allocation2] }
   0xc   :  { %1123 = dma.done.wait [#allocation2], 16 }
   0xd   :  { %1124 = vsyncadd [#allocation2], 4294967280 }
   0xe   :  { %18 = sfence }
   0xf   :  { %19 = vsyncpa [#allocation5], 0 }
  0x10   :  { %21 = vsyncpa [#allocation5 + $0x1], 0 }
  0x11   :  { %22 = vsyncpa [#allocation7], 0 }
  0x12   :  { %24 = vsyncpa [#allocation7 + $0x1], 0  ;;  %s1228_s29 = smov 0   ;;  %s1230_s0 = smov 0  }
  0x13   :  { %s1232_s30 = smov 0   ;;  %s1234_s8 = smov 0  }
  0x14   :  { %s1236_s9 = smov 0   ;;  %s1238_s10 = smov 0  }
  0x15   :  { %s1240_s11 = smov 0   ;;  %s1242_s12 = smov 0  }
  0x16   :  { %s1244_s13 = smov 0   ;;  %s1246_s14 = smov 0  }
  0x17   :  { %s1248_s15 = smov 0  }
  0x18 LB: > { %1566 = sst [smem:[#allocation11_spill]] %s1135_s29  ;;  %s790_s16 = sadd.s32 4294967295, %s1175_s15   ;;  %s1175_s15 = sphi %s1248_s15, %s30_s15   ;;  %s1171_s14 = sphi %s1246_s14, %s1610_s14   ;;  %s1167_s13 = sphi %s1244_s13, %s1609_s13   ;;  %s1163_s12 = sphi %s1242_s12, %s1602_s12   ;;  %s1159_s11 = sphi %s1240_s11, %s1601_s11   ;;  %s1155_s10 = sphi %s1238_s10, %s1600_s10   ;;  %s1151_s9 = sphi %s1236_s9, %s1608_s9   ;;  %s1147_s8 = sphi %s1234_s8, %s1607_s8   ;;  %s1143_s30 = sphi %s1232_s30, %s1598_s30   ;;  %s1139_s0 = sphi %s1230_s0, %s1606_s0   ;;  %s1135_s29 = sphi %s1228_s29, %s1605_s29  }
  0x19   : > { %1567 = sst [smem:[#allocation12_spill]] %s1143_s30  ;;  %s791_s17 = sadd.s32 4294967294, %s1175_s15  }
  0x1a   : > { %1568 = sst [smem:[#allocation13_spill]] %s1147_s8  ;;  %s39_s18 = sadd.s32 1, %s1167_s13 }
  0x1b   : > { %1569 = sst [smem:[#allocation14_spill]] %s1155_s10  ;;  %s42_s19 = sadd.s32 1, %s1171_s14 }
  0x1c   : > { %1570 = sst [smem:[#allocation15_spill]] %s1167_s13  ;;  %p40_p5 = scmp.ge.s32.totalorder %s39_s18, 2 }
  0x1d   : > { %1571 = sst [smem:[#allocation16_spill]] %s1171_s14  ;;  %s187_s20 = sadd.s32 1, %s1155_s10 }
  0x1e   : > { %1572 = sst [smem:[#allocation17_spill]] %s1175_s15  ;;  %p197_p6 = scmp.ne.s32.totalorder %s1155_s10, %s1151_s9 }
  0x1f   : > { %p1290_p7 = scmp.eq.s32.totalorder %s790_s16, 5  ;;  %s1612_s18 = smov (%p40_p5, %s39_s18), 0 }
  0x20   : > { %1574 = sst [smem:[#allocation18_spill]] %s1612_s18  ;;  %s1614_s19 = smov (!%p40_p5, %s42_s19), %s1171_s14 }
  0x21   : > { %s183_s22 = ssub.s32 %s1167_s13, %s1612_s18  ;;  %p1301_p8 = por %p1290_p7, %p197_p6 }
  0x22   : > { %p44_p9 = scmp.ge.s32.totalorder %s1614_s19, 3  ;;  %p203_p10 = scmp.ne.s32.totalorder %s1151_s9, %s1147_s8 }
  0x23   : > { %p1307_p11 = scmp.eq.s32.totalorder %s791_s17, 5  ;;  %s213_s25 = sadd.s32 1, %s1143_s30 }
  0x24   : > { %s1616_s19 = smov (%p44_p9, %s1614_s19), 0  ;;  %p223_p13 = scmp.ne.s32.totalorder %s1143_s30, %s1139_s0 }
  0x25   : > { %1577 = sst [smem:[#allocation19_spill]] %s1616_s19  ;;  %p1316_p12 = por %p1307_p11, %p203_p10 }
  0x26   : > { %s182_s27 = ssub.s32 %s1171_s14, %s1616_s19  ;;  %p229_p0 = scmp.ne.s32.totalorder %s1139_s0, %s1135_s29 }
  0x27   : > { %s1578_s26 = scalar_select %p1316_p12, 1, 0 }
  0x28   : > { %s184_s28 = sor.u32 %s183_s22, %s182_s27  ;;  %p211_p1 = scmp.eq.s32.totalorder %s182_s27, 0 }
  0x29   : > { %1579 = sst [smem:[#allocation20_spill]] %s1578_s26  ;;  %p185_p2 = scmp.eq.s32.totalorder %s184_s28, 0 }
  0x2a   : > { %p1328_p3 = por %p223_p13, %p1290_p7  ;;  %p1340_p4 = por %p229_p0, %p1307_p11 }
  0x2b   : > { %s1333_s17 = scalar_select %p211_p1, %s1143_s30, %s213_s25  }
  0x2c   : > { %s1580_s16 = scalar_select %p1328_p3, 1, 0 }
  0x2d   : > { %1582 = sst [smem:[#allocation22_spill]] %s1333_s17  ;;  %p794_p5 = scmp.ge.s32.totalorder %s1175_s15, 1 }
  0x2e   : > { %1581 = sst [smem:[#allocation21_spill]] %s1580_s16  ;;  %p293_p6 = scmp.lt.s32.totalorder %s1175_s15, 7 }
  0x2f   : > { %s1336_s18 = scalar_select %p185_p2, %s1155_s10, %s187_s20  }
  0x30   : > { %s1584_s13 = scalar_select %p1340_p4, 1, 0 }
  0x31   : > { %1583 = sst [smem:[#allocation23_spill]] %s1336_s18  ;;  %p294_p9 = pnand %p794_p5, %p293_p6 }
  0x32   : > { %1585 = sst [smem:[#allocation24_spill]] %s1584_s13  ;;  %s1556_s21 = sand.u32 (!%p294_p9), 1, %s1151_s9  }
  0x33   : > { %297 = sbr.rel (%p294_p9) target bundleno = 516 (0x204), region = 40  ;;  %s1558_s20 = sand.u32 (!%p294_p9), 1, %s1139_s0  }
  0x34   : > { %s1350_s22 = sshll.u32 (!%p294_p9), %s1556_s21, 3  ;;  %s796_s24 = sshll.u32 (!%p294_p9), %s1558_s20, 3 }
  0x35   : > { %p353_p7 = scmp.lt.s32.totalorder (!%p294_p9), %s1163_s12, 2  ;;  %p364_p10 = scmp.lt.s32.totalorder (!%p294_p9), %s1159_s11, 1 }
  0x36   : > { %s345_s30 = scalar_lea.vmem (!%p294_p9), [#allocation4], %s1350_s22  ;;  %p803_p11 = scmp.ne.s32.totalorder (!%p294_p9), %s1159_s11, 0 }
  0x38   : > { %s354_s25 = scalar_select %p353_p7, %s1163_s12, 2 }
  0x39   : > { %s365_s27 = scalar_select %p364_p10, %s1159_s11, 1 }
  0x3a   : > { %s797_s28 = sshll.u32 %s354_s25, 3  ;;  %s850_s19 = sshll.u32 %s354_s25, 4 }
  0x3b   : > { %s356_s10 = scalar_lea.vmem %s1541_s1, %s797_s28  ;;  %s361_s13 = scalar_lea.vmem %s1542_s2, %s850_s19 }
  0x3c   : > { %s800_s29 = sshll.u32 %s354_s25, 1  ;;  %s1379_s19 = scalar_lea.vmem [#allocation6], %s796_s24 }
  0x3d   : > { %s1364_s21 = sadd.s32 %s800_s29, %s365_s27  ;;  %386 = sbr.rel (%p803_p11) target bundleno = 68 (0x44), region = 44 }
  0x3e   : > { %s368_s8 = scalar_lea.vmem %s1543_s3, %s1364_s21  ;;  %s375_s16 = scalar_lea.vmem %s1544_s4, %s1364_s21 }
  0x3f   : > { %s382_s28 = scalar_lea.vmem %s1545_s5, %s1364_s21 }
  0x42   : > { %v1178_v0 = vmov 0.0  }
  0x43   : > { %387 = vst [vmem:[%s1379_s19] sm:$0xff] %v1178_v0 }
  0x44 PF: > { %s388_s29 = sld [smem:[#allocation3 + %s1163_s12]]  ;;  %s804_s26 = sshll.u32 %s1159_s11, 7 }
  0x4a   : > { %p805_p13 = scmp.ge.s32.totalorder %s804_s26, %s388_s29 }
  0x4c   : > { %393 = sbr.rel (%p805_p13) target bundleno = 467 (0x1d3), region = 48 }
  0x51   : > { %v408_v1 = vld [vmem:[%s361_s13] sm:$0xff]  ;;  %v394_v3 = vlaneseq  ;;  %v1179_v4 = vmov 0   ;;  %v409_v7 = vld [vmem:[%s361_s13 + $0x8] sm:$0xff]  ;;  %v1180_v8 = vmov 0.0   ;;  %v1181_v14 = vmov 1.0   ;;  %v522_v53 = vld [vmem:[%s1379_s19] sm:$0xff] }
  0x52   : > { %v429_v2 = vld [vmem:[%s356_s10] sm:$0xff]  ;;  %1009 = vset.pattern.permute.xlu0 %v1179_v4  ;;  %1010 = vset.pattern.permute.xlu1 %v1179_v4  ;;  %vm1182_vm13 = vmmov 0  }
  0x53   : > { %v806_v5 = vld [vmem:[%s368_s8] ss:$0 sm:$0xff]  ;;  %412 = vperm.xlu0 %1009, %v408_v1   ;;  %432 = vperm.xlu1 %1010, %v429_v2   ;;  %v1385_v6 = vshrl.u32 %v394_v3, 7 }
  0x54   : > { %868 = vmatprep.subr.mxu0 %v1180_v8  ;;  %v1388_v9 = vld [vmem:[%s382_s28] ss:$0 sm:$0xff]  ;;  %900 = vmatprep.mubr.msk.f32.mxu0 %vm1182_vm13, %v1180_v8 }
  0x55   : > { %vm402_vm0 = vcmp.eq.s32.totalorder %v1385_v6, %v806_v5  ;;  %v468_v10 = vadd.s32 120, %v1385_v6  ;;  %v1393_v11 = vadd.s32 8, %v1385_v6  ;;  %v467_v12 = vadd.s32 112, %v1385_v6  ;;  %v809_v47 = vld [vmem:[%s375_s16] ss:$0 sm:$0xff] }
  0x56   : > { %v1397_v13 = vsel %vm402_vm0, 1.0, %v1180_v8  ;;  %v466_v16 = vadd.s32 104, %v1385_v6  ;;  %v465_v17 = vadd.s32 96, %v1385_v6  ;;  %v464_v18 = vadd.s32 88, %v1385_v6 }
  0x57   : > { %417 = vperm.xlu0 %1009, %v409_v7   ;;  %vm489_vm1 = vcmp.eq.s32.totalorder %v468_v10, %v1388_v9  ;;  %vm403_vm2 = vcmp.eq.s32.totalorder %v1393_v11, %v806_v5  ;;  %vm488_vm3 = vcmp.eq.s32.totalorder %v467_v12, %v1388_v9  ;;  %v463_v19 = vadd.s32 80, %v1385_v6 }
  0x58   : > { %869 = vmatpush3.xpose.msk.msra.mxu0 %vm489_vm1, %v1181_v14  ;;  %v1402_v15 = vsel %vm403_vm2, 1.0, %v1180_v8  ;;  %vm487_vm4 = vcmp.eq.s32.totalorder %v466_v16, %v1388_v9  ;;  %vm486_vm5 = vcmp.eq.s32.totalorder %v465_v17, %v1388_v9  ;;  %vm485_vm6 = vcmp.eq.s32.totalorder %v464_v18, %v1388_v9 }
  0x59   : > { %870 = vmatprep.subr.mxu0 %v1180_v8  ;;  %vm484_vm7 = vcmp.eq.s32.totalorder %v463_v19, %v1388_v9  ;;  %v462_v20 = vadd.s32 72, %v1385_v6  ;;  %v461_v21 = vadd.s32 64, %v1385_v6  ;;  %v460_v22 = vadd.s32 56, %v1385_v6 }
  0x5a   : > { %v459_v23 = vadd.s32 48, %v1385_v6  ;;  %v458_v24 = vadd.s32 40, %v1385_v6  ;;  %v457_v25 = vadd.s32 32, %v1385_v6  ;;  %v456_v26 = vadd.s32 24, %v1385_v6 }
  0x5b   : > { %vm483_vm8 = vcmp.eq.s32.totalorder %v462_v20, %v1388_v9  ;;  %vm482_vm9 = vcmp.eq.s32.totalorder %v461_v21, %v1388_v9  ;;  %vm481_vm10 = vcmp.eq.s32.totalorder %v460_v22, %v1388_v9  ;;  %v455_v27 = vadd.s32 16, %v1385_v6 }
  0x5c   : > { %871 = vmatpush3.xpose.msk.msra.mxu0 %vm488_vm3, %v1181_v14  ;;  %vm480_vm11 = vcmp.eq.s32.totalorder %v459_v23, %v1388_v9  ;;  %vm479_vm12 = vcmp.eq.s32.totalorder %v458_v24, %v1388_v9  ;;  %vm478_vm14 = vcmp.eq.s32.totalorder %v457_v25, %v1388_v9  ;;  %vm477_vm15 = vcmp.eq.s32.totalorder %v456_v26, %v1388_v9 }
  0x5d   : > { %872 = vmatprep.subr.mxu0 %v1180_v8  ;;  %vm476_vm0 = vcmp.eq.s32.totalorder %v455_v27, %v1388_v9  ;;  %vm475_vm1 = vcmp.eq.s32.totalorder %v1393_v11, %v1388_v9  ;;  %vm474_vm2 = vcmp.eq.s32.totalorder %v1385_v6, %v1388_v9 }
  0x60   : > { %873 = vmatpush3.xpose.msk.msra.mxu0 %vm487_vm4, %v1181_v14 }
  0x61   : > { %874 = vmatprep.subr.mxu0 %v1180_v8 }
  0x64   : > { %875 = vmatpush3.xpose.msk.msra.mxu0 %vm486_vm5, %v1181_v14 }
  0x65   : > { %876 = vmatprep.subr.mxu0 %v1180_v8 }
  0x68   : > { %877 = vmatpush3.xpose.msk.msra.mxu0 %vm485_vm6, %v1181_v14 }
  0x69   : > { %878 = vmatprep.subr.mxu0 %v1180_v8 }
  0x6c   : > { %879 = vmatpush3.xpose.msk.msra.mxu0 %vm484_vm7, %v1181_v14 }
  0x6d   : > { %880 = vmatprep.subr.mxu0 %v1180_v8 }
  0x70   : > { %881 = vmatpush3.xpose.msk.msra.mxu0 %vm483_vm8, %v1181_v14 }
  0x71   : > { %882 = vmatprep.subr.mxu0 %v1180_v8 }
  0x74   : > { %883 = vmatpush3.xpose.msk.msra.mxu0 %vm482_vm9, %v1181_v14 }
  0x75   : > { %884 = vmatprep.subr.mxu0 %v1180_v8 }
  0x78   : > { %885 = vmatpush3.xpose.msk.msra.mxu0 %vm481_vm10, %v1181_v14 }
  0x79   : > { %886 = vmatprep.subr.mxu0 %v1180_v8 }
  0x7c   : > { %887 = vmatpush3.xpose.msk.msra.mxu0 %vm480_vm11, %v1181_v14 }
  0x7d   : > { %888 = vmatprep.subr.mxu0 %v1180_v8 }
  0x80   : > { %889 = vmatpush3.xpose.msk.msra.mxu0 %vm479_vm12, %v1181_v14 }
  0x81   : > { %890 = vmatprep.subr.mxu0 %v1180_v8 }
  0x84   : > { %891 = vmatpush3.xpose.msk.msra.mxu0 %vm478_vm14, %v1181_v14 }
  0x85   : > { %892 = vmatprep.subr.mxu0 %v1180_v8 }
  0x88   : > { %893 = vmatpush3.xpose.msk.msra.mxu0 %vm477_vm15, %v1181_v14 }
  0x89   : > { %894 = vmatprep.subr.mxu0 %v1180_v8 }
  0x8c   : > { %895 = vmatpush3.xpose.msk.msra.mxu0 %vm476_vm0, %v1181_v14 }
  0x8d   : > { %896 = vmatprep.subr.mxu0 %v1180_v8 }
  0x90   : > { %897 = vmatpush3.xpose.msk.msra.mxu0 %vm475_vm1, %v1181_v14 }
  0x91   : > { %898 = vmatprep.subr.mxu0 %v1180_v8 }
  0x94   : > { %899 = vmatpush3.xpose.msk.msra.mxu0 %vm474_vm2, %v1181_v14 }
  0xce   : > { %v413_v28 = vpop.permute.xlu0 %412  ;;  %v433_v38 = vpop.permute.xlu1 %432 }
  0xcf   : > { %v420_v30 = vmul.f32 %v1397_v13, %v413_v28 }
  0xd2   : > { %v418_v29 = vpop.permute.xlu0 %417 }
  0xd3   : > { %v421_v31 = vmul.f32 %v1402_v15, %v418_v29 }
  0xd5   : > { %v422_v32 = vadd.f32 %v421_v31, %v420_v30 }
  0xd7   : > { %v423_v33 = vrot.slane %v422_v32, 4 }
  0xd9   : > { %v424_v34 = vadd.f32 %v423_v33, %v422_v32 }
  0xdb   : > { %v425_v35 = vrot.slane %v424_v34, 2 }
  0xdd   : > { %v426_v36 = vadd.f32 %v425_v35, %v424_v34 }
  0xdf   : > { %v427_v37 = vrot.slane %v426_v36, 1 }
  0xe1   : > { %v428_v39 = vadd.f32 %v427_v37, %v426_v36 }
  0xe3   : > { %v435_v40 = vadd.f32 %v433_v38, %v428_v39 }
  0xe5   : > { %v445_v41 = vand.u32 2147483647, %v435_v40  ;;  %v444_v48 = vmax.f32 %v435_v40, 0.0  ;;  %v443_v50 = vmul.f32 %v809_v47, %v435_v40 }
  0xe7   : > { %v446_v42 = vsub.f32 0.0, %v445_v41 }
  0xe9   : > { %v447_v43 = vmul.f32 1.442695, %v446_v42 }
  0xeb   : > { %1011 = vpow2.f32 %v447_v43 }
  0xf8   : > { %v1012_v44 = vpop.eup %1011 }
  0xf9   : > { %v449_v45 = vadd.f32 1.0, %v1012_v44 }
  0xfb   : > { %1013 = vlog2.f32 %v449_v45 }
 0x108   : > { %v1014_v46 = vpop.eup %1013 }
 0x109   : > { %v451_v49 = vmul.f32 0.6931472, %v1014_v46 }
 0x10b   : > { %v452_v51 = vadd.f32 %v451_v49, %v444_v48 }
 0x10d   : > { %v453_v52 = vsub.f32 %v443_v50, %v452_v51 }
 0x10f   : > { %454 = vst [vmem:[%s345_s30] sm:$0xff] %v453_v52  ;;  %901 = vmatmul.mubr.f32.vlgmr.msra.gmra.mxu0 %v453_v52 }
 0x1cf   : > { %v589_v54 = vpop.f32.mrf.mxu0 }
 0x1d0   : > { %v593_v55 = vadd.f32 %v589_v54, %v522_v53 }
 0x1d1   : > { %v902_v56 = vpop.f32.mrf.mxu0 }
 0x1d2   : > { %594 = vst [vmem:[%s1379_s19] sm:$0xff] %v593_v55 }
 0x1d3 PF: > { %s845_s10 = sshll.u32 %s1163_s12, 1  ;;  %s616_s15 = sshll.u32 %s345_s30, 4  ;;  %s617_s15 = int_to_ptr.vmem [resolvable:$true] %s616_s15 }
 0x1d4   : > { %s612_s13 = sadd.s32 %s1159_s11, %s845_s10  ;;  %s1586_s24 = sand.u32 1, %s1151_s9  }
 0x1d5   : > { %s846_s16 = sshll.u32 %s612_s13, 7  ;;  %s596_s25 = scalar_lea.sflag [#allocation5], %s1586_s24 }
 0x1d6   : > { %s614_s20 = scalar_lea.hbm %s1546_s6, %s846_s16  ;;  %s1027_s27 = scalar_lea.vmem %s617_s15, 128 }
 0x1d7   : > { %p1028_p0 = scmp.ne.s32.totalorder %s617_s15, %s1027_s27  ;;  %s1183_s14 = smov [#allocation4]  }
 0x1d8   : > { %s1031_s18 = sshll.u32 %s1183_s14, 4  ;;  %s1032_s18 = int_to_ptr.vmem [resolvable:$false] %s1031_s18 }
 0x1d9   : > { %p1029_p1 = pnand %p1028_p0, %p1301_p8  ;;  %s1033_s28 = scalar_lea.vmem %s1032_s18, 256 }
 0x1da   : > { %p1034_p5 = scmp.lt.s32.totalorder %s617_s15, %s1032_s18  ;;  %p1035_p6 = scmp.lt.s32.totalorder %s1033_s28, %s1027_s27 }
 0x1db   : > { %p1030_p2 = pneg %p1029_p1 }
 0x1dc   : > { %p1036_p9 = por %p1035_p6, %p1034_p5 }
 0x1de   : > { %p1037_p7 = pnand %p1036_p9, %p1030_p2 }
 0x1e0   : > { %1040 = shalt.err (!%p1037_p7)
}
 0x1e1   : > { %s1041_s11 = scalar_lea.hbm %s614_s20, 128  ;;  %s1045_s29 = scalar_lea.hbm %s1546_s6, 768 }
 0x1e2   : > { %p1042_p10 = scmp.ne.s32.totalorder %s614_s20, %s1041_s11  ;;  %p1046_p0 = scmp.lt.s32.totalorder %s614_s20, %s1546_s6 }
 0x1e3   : > { %p1047_p1 = scmp.lt.s32.totalorder %s1045_s29, %s1041_s11 }
 0x1e4   : > { %p1043_p11 = pnand %p1042_p10, %p1301_p8 }
 0x1e5   : > { %p1048_p4 = por %p1047_p1, %p1046_p0 }
 0x1e6   : > { %p1044_p13 = pneg %p1043_p11 }
 0x1e8   : > { %p1049_p12 = pnand %p1048_p4, %p1044_p13 }
 0x1ea   : > { %1052 = shalt.err (!%p1049_p12)
}
 0x1eb   : > { %903 = dma.vmem_to_hbm [thread:$0]  (%p1301_p8), %s617_s15, 128, %s614_s20, %s596_s25  }
 0x1ec   : > { %s847_s10 = sshll.u32 %s1163_s12, 7  ;;  %s629_s13 = sshll.u32 %s1379_s19, 4  ;;  %s630_s13 = int_to_ptr.vmem [resolvable:$true] %s629_s13 }
 0x1ed   : > { %s1588_s21 = sld [smem:[#allocation25_spill]]  ;;  %s1589_s27 = sand.u32 1, %s1139_s0  }
 0x1ee   : > { %s601_s14 = scalar_lea.sflag [#allocation7], %s1589_s27  ;;  %s1053_s18 = scalar_lea.vmem %s630_s13, 128 }
 0x1ef   : > { %p1054_p2 = scmp.ne.s32.totalorder %s630_s13, %s1053_s18  ;;  %s1184_s23 = smov [#allocation6]  }
 0x1f0   : > { %s1057_s28 = sshll.u32 %s1184_s23, 4  ;;  %s1058_s28 = int_to_ptr.vmem [resolvable:$false] %s1057_s28 }
 0x1f1   : > { %p1055_p12 = pnand %p1054_p2, %p1328_p3  ;;  %s1059_s11 = scalar_lea.vmem %s1058_s28, 256 }
 0x1f2   : > { %p1060_p5 = scmp.lt.s32.totalorder %s630_s13, %s1058_s28  ;;  %p1061_p8 = scmp.lt.s32.totalorder %s1059_s11, %s1053_s18 }
 0x1f3   : > { %s627_s24 = scalar_lea.hbm %s1588_s21, %s847_s10  ;;  %p1056_p4 = pneg %p1055_p12 }
 0x1f4   : > { %p1062_p6 = por %p1061_p8, %p1060_p5 }
 0x1f6   : > { %p1063_p9 = pnand %p1062_p6, %p1056_p4 }
 0x1f8   : > { %1066 = shalt.err (!%p1063_p9)
}
 0x1f9   : > { %s1067_s12 = scalar_lea.hbm %s627_s24, 128  ;;  %s1071_s20 = scalar_lea.hbm %s1588_s21, 384 }
 0x1fa   : > { %p1068_p7 = scmp.ne.s32.totalorder %s627_s24, %s1067_s12  ;;  %p1072_p13 = scmp.lt.s32.totalorder %s627_s24, %s1588_s21 }
 0x1fb   : > { %p1073_p0 = scmp.lt.s32.totalorder %s1071_s20, %s1067_s12 }
 0x1fc   : > { %p1069_p10 = pnand %p1068_p7, %p1328_p3 }
 0x1fd   : > { %p1074_p1 = por %p1073_p0, %p1072_p13 }
 0x1fe   : > { %p1070_p11 = pneg %p1069_p10 }
 0x200   : > { %p1075_p2 = pnand %p1074_p1, %p1070_p11 }
 0x202   : > { %1078 = shalt.err (!%p1075_p2)
}
 0x203   : > { %904 = dma.vmem_to_hbm [thread:$0]  (%p1328_p3), %s630_s13, 128, %s627_s24, %s601_s14  }
 0x204 PF: > { %s1590_s30 = sld [smem:[#allocation17_spill]] }
 0x205   : > { %s1591_s29 = sld [smem:[#allocation13_spill]] }
 0x206   : > { %s1592_s26 = sld [smem:[#allocation20_spill]] }
 0x20a   : > { %p914_p12 = scmp.ge.s32.totalorder %s1590_s30, 2 }
 0x20b   : > { %s641_s7 = sand.u32 1, %s1591_s29  }
 0x20c   : > { %p1593_p4 = scmp.ne.s32.totalorder %s1592_s26, 0  ;;  %s642_s10 = scalar_lea.sflag [#allocation5], %s641_s7 }
 0x20e   : > { %p908_p5 = pnand %p914_p12, %p1593_p4 }
 0x210   : > { %p909_p8 = pneg %p908_p5 }
 0x212   : > { %1126 = dma.done.wait (%p909_p8), %s642_s10, 128  }
 0x213   : > { %1128 = vsyncadd (%p909_p8), %s642_s10, 4294967168  ;;  %s1594_s16 = sld [smem:[#allocation11_spill]] }
 0x214   : > { %s1595_s17 = sld [smem:[#allocation24_spill]] }
 0x219   : > { %s650_s27 = sand.u32 1, %s1594_s16  }
 0x21a   : > { %p1596_p6 = scmp.ne.s32.totalorder %s1595_s17, 0  ;;  %s651_s8 = scalar_lea.sflag [#allocation7], %s650_s27 }
 0x21c   : > { %p911_p9 = pnand %p914_p12, %p1596_p6 }
 0x21e   : > { %p912_p7 = pneg %p911_p9 }
 0x220   : > { %1130 = dma.done.wait (%p912_p7), %s651_s8, 128  }
 0x221   : > { %1132 = vsyncadd (%p912_p7), %s651_s8, 4294967168  ;;  %s30_s15 = sadd.s32 1, %s1590_s30   ;;  %s1597_s13 = sld [smem:[#allocation12_spill]] }
 0x222   : > { %p27_p3 = scmp.ge.s32.totalorder %s30_s15, 8   ;;  %s1598_s30 = sld [smem:[#allocation22_spill]] }
 0x223   : > { %s1599_s24 = sld [smem:[#allocation14_spill]]  ;;  %s1605_s29 = smov %s1139_s0 }
 0x224   : > { %s1600_s10 = sld [smem:[#allocation23_spill]]  ;;  %s1607_s8 = smov %s1151_s9 }
 0x225   : > { %s1601_s11 = sld [smem:[#allocation15_spill]] }
 0x226   : > { %s1602_s12 = sld [smem:[#allocation16_spill]] }
 0x227   : > { %s1603_s14 = sld [smem:[#allocation18_spill]]  ;;  %s1606_s0 = smov %s1597_s13 }
 0x228   : > { %s1604_s18 = sld [smem:[#allocation19_spill]] }
 0x229   : > { %s1608_s9 = smov %s1599_s24 }
 0x22a   :  { %29 = sbr.rel (!%p27_p3) target bundleno = 24 (0x18), region = 112 }
 0x22d   : > { %s1609_s13 = smov %s1603_s14 }
 0x22e   : > { %s1610_s14 = smov %s1604_s18 }
 0x22f   :  { %656 = vsyncpa [#allocation5], 1 }
 0x230   :  { %658 = vsyncpa [#allocation5 + $0x1], 1 }
 0x231   :  { %659 = vsyncpa [#allocation7], 1 }
 0x232   :  { %661 = vsyncpa [#allocation7 + $0x1], 1 }

</bundles_post_ra>
